<compile_context>
chip_gen: v6e
topology: v6e:2x2x1
jax: 0.10.0
libtpu: 0.0.40
codegen_flags: <defaults>
</compile_context>

<pallas_src>
import functools
import math

import jax
import jax.numpy as jnp
from jax.experimental import pallas as pl
from jax.experimental.pallas import tpu as pltpu


LANE = 128      # vreg lane width: feature / tile dims padded to a multiple of this
SUBLANE = 8


def _round_up(x: int, m: int) -> int:
    return ((x + m - 1) // m) * m


def _cdiv(a: int, b: int) -> int:
    return -(-a // b)


# -----------------------------------------------------------------------------
# Fused MLP kernel: x -> [Linear (+ReLU)] * (L-1) -> Linear -> lane-dense output row
# -----------------------------------------------------------------------------
def _fused_mlp_kernel(*refs, num_layers: int):
    # refs = (x_ref, w0, b0, w1, b1, ..., w_{L-1}, b_{L-1}, o_ref)
    x_ref = refs[0]
    wb = refs[1:1 + 2 * num_layers]
    o_ref = refs[1 + 2 * num_layers]

    compute_dtype = wb[0].dtype          # bf16 by default (MXU-native); f32 optional
    h = x_ref[...].astype(compute_dtype)  # (tile, F_logical) -- unpadded K, MXU handles it

    acc = None
    # Static unroll: weight shapes differ per layer, so a Python unroll (not fori_loop)
    # is the right structure; biases are loaded once per layer, no per-iter broadcasts.
    for i in range(num_layers):
        w = wb[2 * i][...]                               # (F_in[,pad], F_out_pad) compute_dtype
        b = wb[2 * i + 1][...]                           # (1, F_out_pad) float32
        acc = jnp.dot(h, w, preferred_element_type=jnp.float32) + b   # f32 accumulate
        if i < num_layers - 1:
            h = jnp.maximum(acc, 0.0).astype(compute_dtype)

    # acc: (tile, 128) f32, only column 0 is the logical output (padded cols are exact 0
    # from zero-padded weights/bias).  Transpose (XLU slot, idle here) and store row 0 as
    # a lane-dense (1, tile) row -> unmasked vst, 4 B/row of HBM writeback.
    o_ref[...] = jnp.transpose(acc)[0:1, :].astype(o_ref.dtype)


# -----------------------------------------------------------------------------
# pallas_call wrapper
# -----------------------------------------------------------------------------
def fused_mlp_pallas(x_in, padded_params, *, out_dtype, batch_tile=None):
    """Run the fused MLP.

    x_in:  (B_pad, F) -- batch padded, feature dim UNPADDED.
    Returns a (1, B_pad) lane-dense row (logical outputs are columns 0..B-1).

    batch_tile=None -> single grid-less invocation (one VMEM block per array).
    batch_tile=int  -> 1-D grid over batch tiles, marked "parallel" (v7x dual-TC).
    """
    b_pad, f_in = x_in.shape
    num_layers = len(padded_params)
    assert num_layers >= 1, "DNN must have at least one Linear layer"

    kernel = functools.partial(_fused_mlp_kernel, num_layers=num_layers)
    flat_wb = [a for wb in padded_params for a in wb]
    out_shape = jax.ShapeDtypeStruct((1, b_pad), out_dtype)

    if batch_tile is None or batch_tile >= b_pad:
        # Grid-less: every array is a single full-extent VMEM block.
        return pl.pallas_call(kernel, out_shape=out_shape)(x_in, *flat_wb)

    assert b_pad % batch_tile == 0
    n_tiles = b_pad // batch_tile

    # x streams per-tile; weights/biases have constant index_maps -> fetched once,
    # VMEM-resident across the whole grid.  (If profiling ever shows exposed input DMA,
    # deepen only the x spec with pipeline_mode=pl.Buffered(3); never the weight specs.)
    in_specs = [pl.BlockSpec((batch_tile, f_in), lambda i: (i, 0))]
    for (w, b) in padded_params:
        in_specs.append(pl.BlockSpec(w.shape, lambda i: (0, 0)))
        in_specs.append(pl.BlockSpec(b.shape, lambda i: (0, 0)))

    return pl.pallas_call(
        kernel,
        out_shape=out_shape,
        grid_spec=pl.GridSpec(
            grid=(n_tiles,),
            in_specs=in_specs,
            # (1, batch_tile) blocks of the (1, B_pad) output row: lane-dense, unmasked.
            out_specs=pl.BlockSpec((1, batch_tile), lambda i: (0, i)),
        ),
        compiler_params=pltpu.CompilerParams(
            dimension_semantics=("parallel",),   # shard batch tiles across TCs (v7x)
        ),
    )(x_in, *flat_wb)


# -----------------------------------------------------------------------------
# Parameter init / padding / forward wrapper
# -----------------------------------------------------------------------------
def init_dnn_params(no_feature, no_layer, first_hidden_size, key):
    """Deterministic init mimicking torch.nn.Linear defaults
    (uniform(-1/sqrt(fan_in), 1/sqrt(fan_in))).  W stored as (in, out)."""
    assert no_layer >= 1
    dims = []
    in_f = no_feature
    for i in range(no_layer - 1):
        out_f = int(first_hidden_size / 2 ** i)      # matches torch's int(.../ 2**i)
        assert out_f >= 1, "hidden size underflows to 0 (torch Linear would reject this)"
        dims.append((in_f, out_f))
        in_f = out_f
    dims.append((in_f, 1))                           # final Linear -> 1

    params = []
    for (fi, fo) in dims:
        key, kw, kb = jax.random.split(key, 3)
        bound = 1.0 / math.sqrt(fi)
        w = jax.random.uniform(kw, (fi, fo), jnp.float32, -bound, bound)
        b = jax.random.uniform(kb, (1, fo), jnp.float32, -bound, bound)
        params.append((w, b))
    return params


def pad_params_for_lanes(params, compute_dtype):
    """Pad every layer's fan-out (and, for layers > 0, fan-in) to a multiple of 128.
    Layer 0's fan-in stays at the logical feature count (the MXU handles small K),
    so x never needs feature padding.  Weights stored in compute_dtype (bf16 default),
    biases in float32.  Zero padding propagates exactly through matmul/bias/ReLU."""
    padded = []
    for idx, (w, b) in enumerate(params):
        fi, fo = w.shape
        fo_p = max(_round_up(fo, LANE), LANE)
        fi_p = fi if idx == 0 else max(_round_up(fi, LANE), LANE)
        wp = jnp.zeros((fi_p, fo_p), compute_dtype).at[:fi, :fo].set(w.astype(compute_dtype))
        bp = jnp.zeros((1, fo_p), jnp.float32).at[:, :fo].set(b.reshape(1, fo).astype(jnp.float32))
        padded.append((wp, bp))
    return padded


def _choose_tiling(B, batch_tile):
    """Return (b_pad, tile).  tile=None => grid-less single invocation."""
    if batch_tile is None or B < 2 * LANE:
        # Small batch: one block; pad to 128 rows so the final transpose stays on
        # native 128x128 tiles.
        return max(_round_up(B, LANE), LANE), None
    batch_tile = max(LANE, _round_up(batch_tile, LANE))
    # Even number of tiles >= 2 (keeps both v7x TensorCores busy; padded rows are cheap
    # filler, and it is a no-op concern on single-TC v5e/v6e).
    n_tiles = max(2, 2 * _cdiv(_cdiv(B, batch_tile), 2))
    tile = _round_up(_cdiv(B, n_tiles), LANE)
    return n_tiles * tile, tile


def dnn_forward(x, params, *, compute_dtype=jnp.bfloat16, batch_tile=1024):
    """Forward pass matching DNN.forward: Linear+ReLU repeated, final Linear, flatten."""
    B, F = x.shape
    padded_params = pad_params_for_lanes(params, compute_dtype)
    b_pad, tile = _choose_tiling(B, batch_tile)

    # Only the batch dim is ever padded (feature dim streams unpadded); skip the pad
    # pass entirely when the batch already lines up.
    if b_pad != B:
        x_in = jnp.zeros((b_pad, F), x.dtype).at[:B, :].set(x)
    else:
        x_in = x

    out_row = fused_mlp_pallas(x_in, padded_params, out_dtype=x.dtype, batch_tile=tile)
    # (1, B_pad) lane-dense row -> logical (B,) output, matching torch's .flatten().
    return out_row[0, :B]


def dnn_reference(x, params, compute_dtype=jnp.float32):
    """Pure-JAX reference.  compute_dtype=bf16 emulates the kernel's MXU input dtype
    (f32 accumulation, f32 bias, bf16 between layers); float32 is the exact torch math."""
    h = x.astype(compute_dtype)
    n = len(params)
    acc = None
    for i, (w, b) in enumerate(params):
        acc = jnp.dot(h, w.astype(compute_dtype), preferred_element_type=jnp.float32)
        acc = acc + b.reshape(1, -1).astype(jnp.float32)
        if i < n - 1:
            h = jnp.maximum(acc, 0.0).astype(compute_dtype)
    return acc.astype(x.dtype).reshape(-1)


if __name__ == "__main__":
    # Module-consistent config: no_feature=16, no_layer=3, first_hidden_size=32
    # Layers: Linear(16,32)+ReLU, Linear(32,16)+ReLU, Linear(16,1) -> flatten to (batch,)
    no_feature = 16
    no_layer = 3
    first_hidden_size = 32
    batch = 8

    key = jax.random.PRNGKey(0)
    key, kx = jax.random.split(key)
    x = jax.random.normal(kx, (batch, no_feature), jnp.float32)
    params = init_dnn_params(no_feature, no_layer, first_hidden_size, key)

    # 1) float32 compute path (grid-less small batch): exact vs the f32 reference.
    out_f32 = jax.block_until_ready(dnn_forward(x, params, compute_dtype=jnp.float32))
    assert out_f32.shape == (batch,), out_f32.shape
    ref_f32 = dnn_reference(x, params, compute_dtype=jnp.float32)
    assert jnp.allclose(out_f32, ref_f32, atol=1e-5, rtol=1e-5), "f32 small-batch mismatch"

    # 2) default bf16 MXU-input path, small batch: matches the bf16-emulating reference
    #    and stays close to the f32 semantics.
    out_bf16 = jax.block_until_ready(dnn_forward(x, params))
    ref_bf16 = dnn_reference(x, params, compute_dtype=jnp.bfloat16)
    assert jnp.allclose(out_bf16, ref_bf16, atol=5e-3, rtol=5e-3), "bf16 small-batch mismatch"
    assert jnp.allclose(out_bf16, ref_f32, atol=5e-2, rtol=5e-2), "bf16 drifted from f32 semantics"

    # 3) large batch: tiled "parallel" grid path (2 tiles of 1024 -> both v7x TCs).
    key, kx2 = jax.random.split(key)
    x_big = jax.random.normal(kx2, (2048, no_feature), jnp.float32)
    out_big = jax.block_until_ready(dnn_forward(x_big, params))
    assert out_big.shape == (2048,), out_big.shape
    ref_big = dnn_reference(x_big, params, compute_dtype=jnp.bfloat16)
    assert jnp.allclose(out_big, ref_big, atol=5e-3, rtol=5e-3), "tiled-batch mismatch"

    print("KERNEL_OK")
</pallas_src>

<mosaic_0001>
module attributes {stable_mosaic.version = 11 : i64} {
  func.func @_fused_mlp_kernel(%arg0: memref<128x16xf32, #tpu.memory_space<vmem>>, %arg1: memref<16x128xf32, #tpu.memory_space<vmem>>, %arg2: memref<1x128xf32, #tpu.memory_space<vmem>>, %arg3: memref<128x128xf32, #tpu.memory_space<vmem>>, %arg4: memref<1x128xf32, #tpu.memory_space<vmem>>, %arg5: memref<128x128xf32, #tpu.memory_space<vmem>>, %arg6: memref<1x128xf32, #tpu.memory_space<vmem>>, %arg7: memref<1x128xf32, #tpu.memory_space<vmem>>) attributes {dimension_semantics = [], scalar_prefetch = 0 : i64, scratch_operands = 0 : i64, tpu.core_type = #tpu.core_type<tc>} {
    %c0 = arith.constant 0 : index
    %c0_0 = arith.constant 0 : index
    %0 = vector.load %arg0[%c0, %c0_0] : memref<128x16xf32, #tpu.memory_space<vmem>>, vector<128x16xf32>
    %c0_1 = arith.constant 0 : index
    %c0_2 = arith.constant 0 : index
    %1 = vector.load %arg1[%c0_1, %c0_2] : memref<16x128xf32, #tpu.memory_space<vmem>>, vector<16x128xf32>
    %c0_3 = arith.constant 0 : index
    %c0_4 = arith.constant 0 : index
    %2 = vector.load %arg2[%c0_3, %c0_4] : memref<1x128xf32, #tpu.memory_space<vmem>>, vector<1x128xf32>
    %cst = arith.constant dense<0.000000e+00> : vector<128x128xf32>
    %3 = tpu.matmul %0, %1, %cst {dimension_numbers = #tpu.dot_dimension_numbers<[1], [0], [0], [1], [0, 0, 1, 1], [], []>} : vector<128x16xf32>, vector<16x128xf32>, vector<128x128xf32> -> vector<128x128xf32>
    %4 = vector.broadcast %2 : vector<1x128xf32> to vector<128x128xf32>
    %5 = arith.addf %3, %4 : vector<128x128xf32>
    %cst_5 = arith.constant 0.000000e+00 : f32
    %6 = vector.broadcast %cst_5 : f32 to vector<128x128xf32>
    %7 = arith.maximumf %5, %6 : vector<128x128xf32>
    %c0_6 = arith.constant 0 : index
    %c0_7 = arith.constant 0 : index
    %8 = vector.load %arg3[%c0_6, %c0_7] : memref<128x128xf32, #tpu.memory_space<vmem>>, vector<128x128xf32>
    %c0_8 = arith.constant 0 : index
    %c0_9 = arith.constant 0 : index
    %9 = vector.load %arg4[%c0_8, %c0_9] : memref<1x128xf32, #tpu.memory_space<vmem>>, vector<1x128xf32>
    %cst_10 = arith.constant dense<0.000000e+00> : vector<128x128xf32>
    %10 = tpu.matmul %7, %8, %cst_10 {dimension_numbers = #tpu.dot_dimension_numbers<[1], [0], [0], [1], [0, 0, 1, 1], [], []>} : vector<128x128xf32>, vector<128x128xf32>, vector<128x128xf32> -> vector<128x128xf32>
    %11 = vector.broadcast %9 : vector<1x128xf32> to vector<128x128xf32>
    %12 = arith.addf %10, %11 : vector<128x128xf32>
    %cst_11 = arith.constant 0.000000e+00 : f32
    %13 = vector.broadcast %cst_11 : f32 to vector<128x128xf32>
    %14 = arith.maximumf %12, %13 : vector<128x128xf32>
    %c0_12 = arith.constant 0 : index
    %c0_13 = arith.constant 0 : index
    %15 = vector.load %arg5[%c0_12, %c0_13] : memref<128x128xf32, #tpu.memory_space<vmem>>, vector<128x128xf32>
    %c0_14 = arith.constant 0 : index
    %c0_15 = arith.constant 0 : index
    %16 = vector.load %arg6[%c0_14, %c0_15] : memref<1x128xf32, #tpu.memory_space<vmem>>, vector<1x128xf32>
    %cst_16 = arith.constant dense<0.000000e+00> : vector<128x128xf32>
    %17 = tpu.matmul %14, %15, %cst_16 {dimension_numbers = #tpu.dot_dimension_numbers<[1], [0], [0], [1], [0, 0, 1, 1], [], []>} : vector<128x128xf32>, vector<128x128xf32>, vector<128x128xf32> -> vector<128x128xf32>
    %18 = vector.broadcast %16 : vector<1x128xf32> to vector<128x128xf32>
    %19 = arith.addf %17, %18 : vector<128x128xf32>
    %20 = tpu.transpose %19, [1, 0] : vector<128x128xf32> -> vector<128x128xf32>
    %21 = vector.extract_strided_slice %20 {offsets = [0, 0], sizes = [1, 128], strides = [1, 1]} : vector<128x128xf32> to vector<1x128xf32>
    %c0_17 = arith.constant 0 : index
    %c0_18 = arith.constant 0 : index
    %22 = vector.load %arg7[%c0_17, %c0_18] : memref<1x128xf32, #tpu.memory_space<vmem>>, vector<1x128xf32>
    tpu.vector_store %arg7[%c0_17, %c0_18], %21 {strides = array<i32>} : memref<1x128xf32, #tpu.memory_space<vmem>>, vector<1x128xf32>,
    return
  }
}

</mosaic_0001>

<bundles_post_ra>
// kernel: tpu_custom_call.1
= control target key start
LH: loop header
LB: loop body
LE: loop exit
PB: predicated region body
PF: predicated region fallthrough
CT: control target
= control target key end

     0   :  { %12 = vsyncpa [#allocation3], 0  ;;  %s1142_s0 = inlined_call_operand.vmem [shape: f32[128,16], index: 0, kind: input, shape index: {}]   ;;  %s1143_s1 = inlined_call_operand.vmem [shape: f32[16,128], index: 1, kind: input, shape index: {}]   ;;  %s1144_s2 = inlined_call_operand.vmem [shape: f32[1,128], index: 2, kind: input, shape index: {}]   ;;  %s1145_s3 = inlined_call_operand.vmem [shape: f32[128,128], index: 3, kind: input, shape index: {}]   ;;  %s1146_s4 = inlined_call_operand.vmem [shape: f32[1,128], index: 4, kind: input, shape index: {}]   ;;  %s1147_s5 = inlined_call_operand.hbm [shape: f32[128,128], index: 5, kind: input, shape index: {}]   ;;  %s1148_s6 = inlined_call_operand.vmem [shape: f32[1,128], index: 6, kind: input, shape index: {}]   ;;  %s1149_s7 = inlined_call_operand.hbm [shape: f32[1,128], index: 7, kind: output, shape index: {}]  }
   0x1   :  { %13 = vsyncpa [#allocation4], 0  ;;  %s965_s24 = smov [#allocation2]  }
   0x2   :  { %s29_s25 = sshll.u32 %s965_s24, 4  ;;  %s30_s25 = int_to_ptr.vmem [resolvable:$true] %s29_s25 }
   0x3   :  { %s929_s26 = scalar_lea.vmem %s30_s25, 2048  ;;  %p934_p1 = scmp.lt.s32.totalorder %s30_s25, %s30_s25 }
   0x4   :  { %p930_p0 = scmp.ne.s32.totalorder %s30_s25, %s929_s26  ;;  %p935_p2 = scmp.lt.s32.totalorder %s929_s26, %s929_s26 }
   0x6   :  { %p936_p3 = por %p935_p2, %p934_p1 }
   0x8   :  { %p937_p4 = pnand %p936_p3, %p930_p0 }
   0xa   :  { %940 = shalt.err (!%p937_p4)
}
   0xb   :  { %s966_s27 = smov 128   ;;  %s967_s28 = smov 8  }
   0xc   :  { %35 = dma.hbm_to_vmem [thread:$0]  %s1147_s5, 2048, %s30_s25, [#allocation3], %s966_s27, %s966_s27, %s967_s28  }
   0xd   :  { %961 = dma.done.wait [#allocation3], 2048  }
   0xe   :  { %962 = vsyncadd [#allocation3], 4294965248  ;;  %vm66_vm0 = vcmask 130048   ;;  %v58_v0 = vld [vmem:[%s1143_s1 + $0x8] sm:$0xff]  ;;  %v57_v1 = vld [vmem:[%s1143_s1] sm:$0xff] }
   0xf   :  { %v41_v2 = vld [vmem:[%s1142_s0] sm:$0xff]  ;;  %777 = vmatprep.subr.mxu0 %v58_v0  ;;  %v42_v3 = vld [vmem:[%s1142_s0 + $0x8] sm:$0xff]  ;;  %v43_v4 = vld [vmem:[%s1142_s0 + $0x10] sm:$0xff] }
  0x10   :  { %781 = vmatprep.mubr.msk.f32.mxu0 %vm66_vm0, %v41_v2  ;;  %778 = vmatpush3.msra.mxu0 %v58_v0  ;;  %v44_v5 = vld [vmem:[%s1142_s0 + $0x18] sm:$0xff]  ;;  %v290_v7 = vld [vmem:[%s1145_s3 + $0x70] sm:$0xff]  ;;  %v45_v8 = vld [vmem:[%s1142_s0 + $0x20] sm:$0xff] }
  0x11   :  { %779 = vmatprep.subr.mxu0 %v57_v1  ;;  %v291_v6 = vld [vmem:[%s1145_s3 + $0x78] sm:$0xff]  ;;  %v289_v9 = vld [vmem:[%s1145_s3 + $0x68] sm:$0xff]  ;;  %v288_v11 = vld [vmem:[%s1145_s3 + $0x60] sm:$0xff] }
  0x12   :  { %780 = vmatpush3.msra.mxu0 %v57_v1  ;;  %805 = vmatprep.subr.mxu1 %v291_v6  ;;  %v46_v10 = vld [vmem:[%s1142_s0 + $0x28] sm:$0xff]  ;;  %v47_v12 = vld [vmem:[%s1142_s0 + $0x30] sm:$0xff]  ;;  %v287_v13 = vld [vmem:[%s1145_s3 + $0x58] sm:$0xff] }
  0x13   :  { %782 = vmatmul.mubr.msk.f32.vlgmr.msra.gmra.mxu0 %vm66_vm0, %v42_v3  ;;  %806 = vmatpush3.msra.mxu1 %v291_v6  ;;  %v48_v14 = vld [vmem:[%s1142_s0 + $0x38] sm:$0xff]  ;;  %v286_v15 = vld [vmem:[%s1145_s3 + $0x50] sm:$0xff]  ;;  %v49_v16 = vld [vmem:[%s1142_s0 + $0x40] sm:$0xff] }
  0x14   :  { %784 = vmatprep.mubr.msk.f32.mxu0 %vm66_vm0, %v43_v4  ;;  %807 = vmatprep.subr.mxu1 %v290_v7  ;;  %v285_v17 = vld [vmem:[%s1145_s3 + $0x48] sm:$0xff]  ;;  %v284_v19 = vld [vmem:[%s1145_s3 + $0x40] sm:$0xff]  ;;  %v51_v20 = vld [vmem:[%s1142_s0 + $0x50] sm:$0xff] }
  0x15   :  { %808 = vmatpush3.msra.mxu1 %v290_v7  ;;  %v50_v18 = vld [vmem:[%s1142_s0 + $0x48] sm:$0xff]  ;;  %v283_v21 = vld [vmem:[%s1145_s3 + $0x38] sm:$0xff]  ;;  %v282_v23 = vld [vmem:[%s1145_s3 + $0x30] sm:$0xff] }
  0x16   :  { %809 = vmatprep.subr.mxu1 %v289_v9  ;;  %v52_v22 = vld [vmem:[%s1142_s0 + $0x58] sm:$0xff]  ;;  %v53_v24 = vld [vmem:[%s1142_s0 + $0x60] sm:$0xff]  ;;  %v281_v25 = vld [vmem:[%s1145_s3 + $0x28] sm:$0xff] }
  0x17   :  { %785 = vmatmul.mubr.msk.f32.gmra.mxu0 %vm66_vm0, %v44_v5  ;;  %810 = vmatpush3.msra.mxu1 %v289_v9  ;;  %v54_v26 = vld [vmem:[%s1142_s0 + $0x68] sm:$0xff]  ;;  %v280_v27 = vld [vmem:[%s1145_s3 + $0x20] sm:$0xff]  ;;  %v55_v28 = vld [vmem:[%s1142_s0 + $0x70] sm:$0xff] }
  0x18   :  { %787 = vmatprep.mubr.msk.f32.mxu0 %vm66_vm0, %v45_v8  ;;  %811 = vmatprep.subr.mxu1 %v288_v11  ;;  %v56_v29 = vld [vmem:[%s1142_s0 + $0x78] sm:$0xff]  ;;  %v278_v31 = vld [vmem:[%s1145_s3 + $0x10] sm:$0xff]  ;;  %v277_v32 = vld [vmem:[%s1145_s3 + $0x8] sm:$0xff] }
  0x19   :  { %812 = vmatpush3.msra.mxu1 %v288_v11  ;;  %v279_v30 = vld [vmem:[%s1145_s3 + $0x18] sm:$0xff]  ;;  %v276_v33 = vld [vmem:[%s1145_s3] sm:$0xff]  ;;  %v474_v35 = vld [vmem:[#allocation2 + $0x70] sm:$0xff] }
  0x1a   :  { %813 = vmatprep.subr.mxu1 %v287_v13  ;;  %v475_v34 = vld [vmem:[#allocation2 + $0x78] sm:$0xff]  ;;  %v473_v36 = vld [vmem:[#allocation2 + $0x68] sm:$0xff]  ;;  %v472_v37 = vld [vmem:[#allocation2 + $0x60] sm:$0xff] }
  0x1b   :  { %788 = vmatmul.mubr.msk.f32.gmra.mxu0 %vm66_vm0, %v46_v10  ;;  %814 = vmatpush3.msra.mxu1 %v287_v13  ;;  %v471_v38 = vld [vmem:[#allocation2 + $0x58] sm:$0xff]  ;;  %v470_v39 = vld [vmem:[#allocation2 + $0x50] sm:$0xff]  ;;  %v469_v40 = vld [vmem:[#allocation2 + $0x48] sm:$0xff] }
  0x1c   :  { %790 = vmatprep.mubr.msk.f32.mxu0 %vm66_vm0, %v47_v12  ;;  %815 = vmatprep.subr.mxu1 %v286_v15  ;;  %v468_v41 = vld [vmem:[#allocation2 + $0x40] sm:$0xff]  ;;  %v467_v42 = vld [vmem:[#allocation2 + $0x38] sm:$0xff]  ;;  %v466_v43 = vld [vmem:[#allocation2 + $0x30] sm:$0xff] }
  0x1d   :  { %816 = vmatpush3.msra.mxu1 %v286_v15  ;;  %861 = vmatprep.subr.mxu0 %v475_v34  ;;  %v465_v44 = vld [vmem:[#allocation2 + $0x28] sm:$0xff]  ;;  %v464_v45 = vld [vmem:[#allocation2 + $0x20] sm:$0xff]  ;;  %v463_v46 = vld [vmem:[#allocation2 + $0x18] sm:$0xff] }
  0x1e   :  { %817 = vmatprep.subr.mxu1 %v285_v17  ;;  %862 = vmatpush3.msra.mxu0 %v475_v34  ;;  %v676_v47 = vld [vmem:[%s1144_s2] ss:$0 sm:$0xff] }
  0x1f   :  { %791 = vmatmul.mubr.msk.f32.gmra.mxu0 %vm66_vm0, %v48_v14  ;;  %818 = vmatpush3.msra.mxu1 %v285_v17  ;;  %v460_v34 = vld [vmem:[#allocation2] sm:$0xff] }
  0x20   :  { %793 = vmatprep.mubr.msk.f32.mxu0 %vm66_vm0, %v49_v16  ;;  %819 = vmatprep.subr.mxu1 %v284_v19 }
  0x21   :  { %820 = vmatpush3.msra.mxu1 %v284_v19  ;;  %863 = vmatprep.subr.mxu0 %v474_v35 }
  0x22   :  { %821 = vmatprep.subr.mxu1 %v283_v21  ;;  %864 = vmatpush3.msra.mxu0 %v474_v35  ;;  %v693_v35 = vld [vmem:[%s1146_s4] ss:$0 sm:$0xff] }
  0x23   :  { %794 = vmatmul.mubr.msk.f32.gmra.mxu0 %vm66_vm0, %v50_v18  ;;  %822 = vmatpush3.msra.mxu1 %v283_v21 }
  0x24   :  { %796 = vmatprep.mubr.msk.f32.mxu0 %vm66_vm0, %v51_v20  ;;  %823 = vmatprep.subr.mxu1 %v282_v23 }
  0x25   :  { %824 = vmatpush3.msra.mxu1 %v282_v23  ;;  %865 = vmatprep.subr.mxu0 %v473_v36 }
  0x26   :  { %825 = vmatprep.subr.mxu1 %v281_v25  ;;  %866 = vmatpush3.msra.mxu0 %v473_v36 }
  0x27   :  { %797 = vmatmul.mubr.msk.f32.gmra.mxu0 %vm66_vm0, %v52_v22  ;;  %826 = vmatpush3.msra.mxu1 %v281_v25 }
  0x28   :  { %799 = vmatprep.mubr.msk.f32.mxu0 %vm66_vm0, %v53_v24  ;;  %827 = vmatprep.subr.mxu1 %v280_v27 }
  0x29   :  { %828 = vmatpush3.msra.mxu1 %v280_v27  ;;  %867 = vmatprep.subr.mxu0 %v472_v37 }
  0x2a   :  { %829 = vmatprep.subr.mxu1 %v279_v30  ;;  %868 = vmatpush3.msra.mxu0 %v472_v37 }
  0x2b   :  { %800 = vmatmul.mubr.msk.f32.gmra.mxu0 %vm66_vm0, %v54_v26  ;;  %830 = vmatpush3.msra.mxu1 %v279_v30 }
  0x2c   :  { %802 = vmatprep.mubr.msk.f32.mxu0 %vm66_vm0, %v55_v28  ;;  %831 = vmatprep.subr.mxu1 %v278_v31 }
  0x2d   :  { %832 = vmatpush3.msra.mxu1 %v278_v31  ;;  %869 = vmatprep.subr.mxu0 %v471_v38 }
  0x2e   :  { %833 = vmatprep.subr.mxu1 %v277_v32  ;;  %870 = vmatpush3.msra.mxu0 %v471_v38 }
  0x2f   :  { %803 = vmatmul.mubr.msk.f32.gmra.mxu0 %vm66_vm0, %v56_v29  ;;  %834 = vmatpush3.msra.mxu1 %v277_v32  ;;  %v462_v32 = vld [vmem:[#allocation2 + $0x10] sm:$0xff] }
  0x30   :  { %835 = vmatprep.subr.mxu1 %v276_v33  ;;  %871 = vmatprep.subr.mxu0 %v470_v39 }
  0x31   :  { %836 = vmatpush3.msra.mxu1 %v276_v33  ;;  %872 = vmatpush3.msra.mxu0 %v470_v39  ;;  %v461_v33 = vld [vmem:[#allocation2 + $0x8] sm:$0xff] }
  0x32   :  { %873 = vmatprep.subr.mxu0 %v469_v40 }
  0x33   :  { %874 = vmatpush3.msra.mxu0 %v469_v40 }
  0x34   :  { %875 = vmatprep.subr.mxu0 %v468_v41 }
  0x35   :  { %876 = vmatpush3.msra.mxu0 %v468_v41 }
  0x36   :  { %877 = vmatprep.subr.mxu0 %v467_v42 }
  0x37   :  { %878 = vmatpush3.msra.mxu0 %v467_v42 }
  0x38   :  { %879 = vmatprep.subr.mxu0 %v466_v43 }
  0x39   :  { %880 = vmatpush3.msra.mxu0 %v466_v43 }
  0x3a   :  { %881 = vmatprep.subr.mxu0 %v465_v44 }
  0x3b   :  { %882 = vmatpush3.msra.mxu0 %v465_v44 }
  0x3c   :  { %883 = vmatprep.subr.mxu0 %v464_v45 }
  0x3d   :  { %884 = vmatpush3.msra.mxu0 %v464_v45 }
  0x3e   :  { %885 = vmatprep.subr.mxu0 %v463_v46 }
  0x3f   :  { %886 = vmatpush3.msra.mxu0 %v463_v46 }
  0x40   :  { %887 = vmatprep.subr.mxu0 %v462_v32 }
  0x41   :  { %888 = vmatpush3.msra.mxu0 %v462_v32 }
  0x42   :  { %889 = vmatprep.subr.mxu0 %v461_v33 }
  0x43   :  { %890 = vmatpush3.msra.mxu0 %v461_v33 }
  0x44   :  { %891 = vmatprep.subr.mxu0 %v460_v34 }
  0x45   :  { %892 = vmatpush3.msra.mxu0 %v460_v34 }
  0xd3   :  { %v783_v48 = vpop.f32.mrf.mxu0 }
  0xd4   :  { %v187_v49 = vadd.f32 %v783_v48, %v676_v47 }
  0xd5   :  { %v181_v50 = vpop.f32.mrf.mxu0 }
  0xd6   :  { %v182_v51 = vadd.f32 %v676_v47, %v181_v50  ;;  %v261_v55 = vmax.f32 %v187_v49, 0.0 }
  0xd7   :  { %v786_v52 = vpop.f32.mrf.mxu0 }
  0xd8   :  { %v197_v53 = vadd.f32 %v786_v52, %v676_v47  ;;  %v260_v54 = vmax.f32 %v182_v51, 0.0 }
  0xd9   :  { %v191_v56 = vpop.f32.mrf.mxu0 }
  0xda   :  { %v192_v57 = vadd.f32 %v676_v47, %v191_v56  ;;  %837 = vmatprep.mubr.f32.mxu1 %v260_v54  ;;  %v263_v58 = vmax.f32 %v197_v53, 0.0 }
  0xdb   :  { %v789_v59 = vpop.f32.mrf.mxu0  ;;  %838 = vmatmul.mubr.f32.vlgmr.msra.gmra.mxu1 %v261_v55 }
  0xdc   :  { %v262_v60 = vmax.f32 %v192_v57, 0.0  ;;  %v207_v61 = vadd.f32 %v789_v59, %v676_v47 }
  0xdd   :  { %v201_v62 = vpop.f32.mrf.mxu0 }
  0xde   :  { %v202_v63 = vadd.f32 %v676_v47, %v201_v62  ;;  %840 = vmatprep.mubr.f32.mxu1 %v262_v60  ;;  %v265_v0 = vmax.f32 %v207_v61, 0.0 }
  0xdf   :  { %841 = vmatmul.mubr.f32.gmra.mxu1 %v263_v58  ;;  %v792_v1 = vpop.f32.mrf.mxu0 }
  0xe0   :  { %v264_v2 = vmax.f32 %v202_v63, 0.0  ;;  %v217_v3 = vadd.f32 %v792_v1, %v676_v47 }
  0xe1   :  { %v211_v4 = vpop.f32.mrf.mxu0 }
  0xe2   :  { %843 = vmatprep.mubr.f32.mxu1 %v264_v2  ;;  %v212_v5 = vadd.f32 %v676_v47, %v211_v4  ;;  %v267_v6 = vmax.f32 %v217_v3, 0.0 }
  0xe3   :  { %844 = vmatmul.mubr.f32.gmra.mxu1 %v265_v0  ;;  %v795_v7 = vpop.f32.mrf.mxu0 }
  0xe4   :  { %v266_v8 = vmax.f32 %v212_v5, 0.0  ;;  %v227_v9 = vadd.f32 %v795_v7, %v676_v47 }
  0xe5   :  { %v221_v10 = vpop.f32.mrf.mxu0 }
  0xe6   :  { %846 = vmatprep.mubr.f32.mxu1 %v266_v8  ;;  %v222_v11 = vadd.f32 %v676_v47, %v221_v10  ;;  %v269_v12 = vmax.f32 %v227_v9, 0.0 }
  0xe7   :  { %847 = vmatmul.mubr.f32.gmra.mxu1 %v267_v6  ;;  %v798_v13 = vpop.f32.mrf.mxu0 }
  0xe8   :  { %v268_v14 = vmax.f32 %v222_v11, 0.0  ;;  %v237_v15 = vadd.f32 %v798_v13, %v676_v47 }
  0xe9   :  { %v231_v16 = vpop.f32.mrf.mxu0 }
  0xea   :  { %849 = vmatprep.mubr.f32.mxu1 %v268_v14  ;;  %v232_v17 = vadd.f32 %v676_v47, %v231_v16  ;;  %v271_v18 = vmax.f32 %v237_v15, 0.0 }
  0xeb   :  { %850 = vmatmul.mubr.f32.gmra.mxu1 %v269_v12  ;;  %v801_v19 = vpop.f32.mrf.mxu0 }
  0xec   :  { %v270_v20 = vmax.f32 %v232_v17, 0.0  ;;  %v247_v21 = vadd.f32 %v801_v19, %v676_v47 }
  0xed   :  { %v241_v22 = vpop.f32.mrf.mxu0 }
  0xee   :  { %852 = vmatprep.mubr.f32.mxu1 %v270_v20  ;;  %v242_v23 = vadd.f32 %v676_v47, %v241_v22  ;;  %v273_v24 = vmax.f32 %v247_v21, 0.0  ;;  %v694_v21 = vld [vmem:[%s1148_s6] ss:$0 sm:$0xff]  ;;  %s968_s6 = smov [#allocation5]  }
  0xef   :  { %853 = vmatmul.mubr.f32.gmra.mxu1 %v271_v18  ;;  %v804_v25 = vpop.f32.mrf.mxu0  ;;  %s667_s26 = sshll.u32 %s968_s6, 4  ;;  %s668_s26 = int_to_ptr.vmem [resolvable:$true] %s667_s26 }
  0xf0   :  { %v272_v26 = vmax.f32 %v242_v23, 0.0  ;;  %v257_v27 = vadd.f32 %v804_v25, %v676_v47  ;;  %s941_s27 = scalar_lea.vmem %s668_s26, 16  ;;  %s945_s28 = scalar_lea.vmem %s668_s26, 32 }
  0xf1   :  { %v251_v28 = vpop.f32.mrf.mxu0  ;;  %p942_p5 = scmp.ne.s32.totalorder %s668_s26, %s941_s27  ;;  %p946_p6 = scmp.lt.s32.totalorder %s668_s26, %s668_s26 }
  0xf2   :  { %855 = vmatprep.mubr.f32.mxu1 %v272_v26  ;;  %v252_v29 = vadd.f32 %v676_v47, %v251_v28  ;;  %v275_v30 = vmax.f32 %v257_v27, 0.0  ;;  %p947_p7 = scmp.lt.s32.totalorder %s945_s28, %s941_s27 }
  0xf3   :  { %856 = vmatmul.mubr.f32.gmra.mxu1 %v273_v24 }
  0xf4   :  { %v274_v31 = vmax.f32 %v252_v29, 0.0  ;;  %p948_p8 = por %p947_p7, %p946_p6 }
  0xf6   :  { %858 = vmatprep.mubr.f32.mxu1 %v274_v31  ;;  %p949_p9 = pnand %p948_p8, %p942_p5 }
  0xf7   :  { %859 = vmatmul.mubr.f32.gmra.mxu1 %v275_v30 }
 0x19b   :  { %v839_v36 = vpop.f32.mrf.mxu1 }
 0x19c   :  { %v371_v37 = vadd.f32 %v839_v36, %v693_v35 }
 0x19d   :  { %v365_v38 = vpop.f32.mrf.mxu1 }
 0x19e   :  { %v366_v39 = vadd.f32 %v693_v35, %v365_v38  ;;  %v445_v42 = vmax.f32 %v371_v37, 0.0 }
 0x19f   :  { %v842_v40 = vpop.f32.mrf.mxu1 }
 0x1a0   :  { %v444_v41 = vmax.f32 %v366_v39, 0.0  ;;  %v381_v43 = vadd.f32 %v842_v40, %v693_v35 }
 0x1a1   :  { %v375_v44 = vpop.f32.mrf.mxu1 }
 0x1a2   :  { %v376_v45 = vadd.f32 %v693_v35, %v375_v44  ;;  %893 = vmatprep.mubr.f32.mxu0 %v444_v41  ;;  %v447_v49 = vmax.f32 %v381_v43, 0.0 }
 0x1a3   :  { %v845_v46 = vpop.f32.mrf.mxu1  ;;  %894 = vmatmul.mubr.f32.vlgmr.msra.gmra.mxu0 %v445_v42 }
 0x1a4   :  { %v446_v47 = vmax.f32 %v376_v45, 0.0  ;;  %v391_v48 = vadd.f32 %v845_v46, %v693_v35 }
 0x1a5   :  { %v385_v50 = vpop.f32.mrf.mxu1 }
 0x1a6   :  { %v386_v51 = vadd.f32 %v693_v35, %v385_v50  ;;  %896 = vmatprep.mubr.f32.mxu0 %v446_v47  ;;  %v449_v52 = vmax.f32 %v391_v48, 0.0 }
 0x1a7   :  { %897 = vmatmul.mubr.f32.gmra.mxu0 %v447_v49  ;;  %v848_v53 = vpop.f32.mrf.mxu1 }
 0x1a8   :  { %v448_v54 = vmax.f32 %v386_v51, 0.0  ;;  %v401_v55 = vadd.f32 %v848_v53, %v693_v35 }
 0x1a9   :  { %v395_v56 = vpop.f32.mrf.mxu1 }
 0x1aa   :  { %899 = vmatprep.mubr.f32.mxu0 %v448_v54  ;;  %v396_v57 = vadd.f32 %v693_v35, %v395_v56  ;;  %v451_v58 = vmax.f32 %v401_v55, 0.0 }
 0x1ab   :  { %900 = vmatmul.mubr.f32.gmra.mxu0 %v449_v52  ;;  %v851_v59 = vpop.f32.mrf.mxu1 }
 0x1ac   :  { %v450_v60 = vmax.f32 %v396_v57, 0.0  ;;  %v411_v61 = vadd.f32 %v851_v59, %v693_v35 }
 0x1ad   :  { %v405_v62 = vpop.f32.mrf.mxu1 }
 0x1ae   :  { %902 = vmatprep.mubr.f32.mxu0 %v450_v60  ;;  %v406_v63 = vadd.f32 %v693_v35, %v405_v62  ;;  %v453_v0 = vmax.f32 %v411_v61, 0.0 }
 0x1af   :  { %903 = vmatmul.mubr.f32.gmra.mxu0 %v451_v58  ;;  %v854_v1 = vpop.f32.mrf.mxu1 }
 0x1b0   :  { %v452_v2 = vmax.f32 %v406_v63, 0.0  ;;  %v421_v3 = vadd.f32 %v854_v1, %v693_v35 }
 0x1b1   :  { %v415_v4 = vpop.f32.mrf.mxu1 }
 0x1b2   :  { %905 = vmatprep.mubr.f32.mxu0 %v452_v2  ;;  %v416_v5 = vadd.f32 %v693_v35, %v415_v4  ;;  %v455_v6 = vmax.f32 %v421_v3, 0.0 }
 0x1b3   :  { %906 = vmatmul.mubr.f32.gmra.mxu0 %v453_v0  ;;  %v857_v7 = vpop.f32.mrf.mxu1 }
 0x1b4   :  { %v454_v8 = vmax.f32 %v416_v5, 0.0  ;;  %v431_v9 = vadd.f32 %v857_v7, %v693_v35 }
 0x1b5   :  { %v425_v10 = vpop.f32.mrf.mxu1 }
 0x1b6   :  { %908 = vmatprep.mubr.f32.mxu0 %v454_v8  ;;  %v426_v11 = vadd.f32 %v693_v35, %v425_v10  ;;  %v457_v12 = vmax.f32 %v431_v9, 0.0 }
 0x1b7   :  { %909 = vmatmul.mubr.f32.gmra.mxu0 %v455_v6  ;;  %v860_v13 = vpop.f32.mrf.mxu1 }
 0x1b8   :  { %v456_v14 = vmax.f32 %v426_v11, 0.0  ;;  %v441_v15 = vadd.f32 %v860_v13, %v693_v35 }
 0x1b9   :  { %v435_v16 = vpop.f32.mrf.mxu1 }
 0x1ba   :  { %911 = vmatprep.mubr.f32.mxu0 %v456_v14  ;;  %v436_v17 = vadd.f32 %v693_v35, %v435_v16  ;;  %v459_v18 = vmax.f32 %v441_v15, 0.0 }
 0x1bb   :  { %912 = vmatmul.mubr.f32.gmra.mxu0 %v457_v12 }
 0x1bc   :  { %v458_v19 = vmax.f32 %v436_v17, 0.0 }
 0x1be   :  { %914 = vmatprep.mubr.f32.mxu0 %v458_v19 }
 0x1bf   :  { %915 = vmatmul.mubr.f32.gmra.mxu0 %v459_v18 }
 0x263   :  { %v895_v20 = vpop.f32.mrf.mxu0 }
 0x264   :  { %v555_v25 = vadd.f32 %v895_v20, %v694_v21 }
 0x265   :  { %v549_v22 = vpop.f32.mrf.mxu0 }
 0x266   :  { %v550_v23 = vadd.f32 %v694_v21, %v549_v22 }
 0x267   :  { %v898_v24 = vpop.f32.mrf.mxu0 }
 0x268   :  { %628 = vxpose.xlu0.b32.start [1/16] (narrow) %v550_v23, 8  ;;  %v565_v29 = vadd.f32 %v898_v24, %v694_v21 }
 0x269   :  { %v559_v26 = vpop.f32.mrf.mxu0 }
 0x26a   :  { %v560_v27 = vadd.f32 %v694_v21, %v559_v26 }
 0x26b   :  { %v901_v28 = vpop.f32.mrf.mxu0 }
 0x26c   :  { %629 = vxpose.xlu0.b32.cont [2/16] (narrow) %v555_v25, 8  ;;  %v575_v33 = vadd.f32 %v901_v28, %v694_v21 }
 0x26d   :  { %v569_v30 = vpop.f32.mrf.mxu0 }
 0x26e   :  { %v570_v31 = vadd.f32 %v694_v21, %v569_v30 }
 0x26f   :  { %v904_v32 = vpop.f32.mrf.mxu0 }
 0x270   :  { %630 = vxpose.xlu0.b32.cont [3/16] (narrow) %v560_v27, 8  ;;  %v585_v37 = vadd.f32 %v904_v32, %v694_v21 }
 0x271   :  { %v579_v34 = vpop.f32.mrf.mxu0 }
 0x272   :  { %v580_v35 = vadd.f32 %v694_v21, %v579_v34 }
 0x273   :  { %v907_v36 = vpop.f32.mrf.mxu0 }
 0x274   :  { %631 = vxpose.xlu0.b32.cont [4/16] (narrow) %v565_v29, 8  ;;  %v595_v41 = vadd.f32 %v907_v36, %v694_v21 }
 0x275   :  { %v589_v38 = vpop.f32.mrf.mxu0 }
 0x276   :  { %v590_v39 = vadd.f32 %v694_v21, %v589_v38 }
 0x277   :  { %v910_v40 = vpop.f32.mrf.mxu0 }
 0x278   :  { %632 = vxpose.xlu0.b32.cont [5/16] (narrow) %v570_v31, 8  ;;  %v605_v45 = vadd.f32 %v910_v40, %v694_v21 }
 0x279   :  { %v599_v42 = vpop.f32.mrf.mxu0 }
 0x27a   :  { %v600_v43 = vadd.f32 %v694_v21, %v599_v42 }
 0x27b   :  { %v913_v44 = vpop.f32.mrf.mxu0 }
 0x27c   :  { %633 = vxpose.xlu0.b32.cont [6/16] (narrow) %v575_v33, 8  ;;  %v615_v49 = vadd.f32 %v913_v44, %v694_v21 }
 0x27d   :  { %v609_v46 = vpop.f32.mrf.mxu0 }
 0x27e   :  { %v610_v47 = vadd.f32 %v694_v21, %v609_v46 }
 0x27f   :  { %v916_v48 = vpop.f32.mrf.mxu0 }
 0x280   :  { %634 = vxpose.xlu0.b32.cont [7/16] (narrow) %v580_v35, 8  ;;  %v625_v52 = vadd.f32 %v916_v48, %v694_v21 }
 0x281   :  { %v619_v50 = vpop.f32.mrf.mxu0 }
 0x282   :  { %v620_v51 = vadd.f32 %v694_v21, %v619_v50 }
 0x284   :  { %635 = vxpose.xlu0.b32.cont [8/16] (narrow) %v585_v37, 8 }
 0x288   :  { %636 = vxpose.xlu0.b32.cont [9/16] (narrow) %v590_v39, 8 }
 0x28c   :  { %637 = vxpose.xlu0.b32.cont [10/16] (narrow) %v595_v41, 8 }
 0x290   :  { %638 = vxpose.xlu0.b32.cont [11/16] (narrow) %v600_v43, 8 }
 0x294   :  { %639 = vxpose.xlu0.b32.cont [12/16] (narrow) %v605_v45, 8 }
 0x298   :  { %640 = vxpose.xlu0.b32.cont [13/16] (narrow) %v610_v47, 8 }
 0x29c   :  { %641 = vxpose.xlu0.b32.cont [14/16] (narrow) %v615_v49, 8 }
 0x2a0   :  { %642 = vxpose.xlu0.b32.cont [15/16] (narrow) %v620_v51, 8 }
 0x2a4   :  { %643 = vxpose.xlu0.b32.end [16/16] (narrow) %v625_v52, 8 }
 0x2e4   :  { %v644_v53 = vpop.trf.xlu0 }
 0x2e5   :  { %660 = vst [vmem:[#allocation5] sm:$0x1] %v644_v53 }
 0x2e6   :  { %952 = shalt.err (!%p949_p9)
}
 0x2e7   :  { %670 = dma.vmem_to_hbm [thread:$0]  %s668_s26, 16, %s1149_s7, [#allocation4]  }
 0x2e8   :  { %963 = dma.done.wait [#allocation4], 16  }
 0x2e9   :  { %964 = vsyncadd [#allocation4], 4294967280 }
 0x2ea   :  { %674 = vsyncpa [#allocation3], 1 }
 0x2eb   :  { %675 = vsyncpa [#allocation4], 1 }

</bundles_post_ra>
